<compile_context>
chip_gen: v5e
topology: v5e:2x2
jax: 0.10.0
libtpu: 0.0.40
codegen_flags: <defaults>
</compile_context>

<pallas_src>
import jax
import jax.numpy as jnp
from jax.experimental import pallas as pl
from jax.experimental.pallas import tpu as pltpu


def _round_up(n, m):
    return ((n + m - 1) // m) * m


def attack_mlp_kernel(x_ref, w1_ref, b1_ref, w2_ref, b2_ref, o_ref):
    # x arrives as f32; cast to bf16 inside the kernel (VALU slack is huge
    # here) so the wrapper never does a separate XLA pass over x.
    x_bf = x_ref[...].astype(jnp.bfloat16)
    # hidden = relu(x @ W1 + b1): bf16 MXU inputs, f32 accumulate + epilogue.
    h = jnp.dot(x_bf, w1_ref[...], preferred_element_type=jnp.float32)
    h = jnp.maximum(h + b1_ref[...], 0.0)
    # out = hidden @ W2 + b2.  Note: re-casting hidden to bf16 adds one bf16
    # rounding step vs. the pure-f32 PyTorch reference (covered by tolerance).
    out = jnp.dot(h.astype(jnp.bfloat16), w2_ref[...],
                  preferred_element_type=jnp.float32)
    o_ref[...] = (out + b2_ref[...]).astype(o_ref.dtype)


def attack_mlp(x, w1, b1, w2, b2, *, block_batch=4096):
    """x: (B, D_in); w1: (D_in, H); b1: (1, H); w2: (H, C); b2: (1, C).

    Weights are stored pre-transposed relative to PyTorch nn.Linear (which
    stores (out, in)).  Returns f32 logits of shape (B, C), matching the
    PyTorch forward.
    """
    B, D_in = x.shape
    H = w1.shape[1]
    C = w2.shape[1]

    # --- batch tiling --------------------------------------------------------
    # Pad B only to a multiple of 8 sublanes, then pick the tile size from the
    # implied tile count so tail waste is at most a few rows.  Keep >= 2 tiles
    # whenever there are >= 16 rows so v7x can use both TensorCores; on
    # v5e/v6e (single TC) the extra tile is essentially free.
    B_pad8 = _round_up(B, 8)
    num_tiles = max(pl.cdiv(B_pad8, block_batch), min(2, B_pad8 // 8))
    tm = _round_up(pl.cdiv(B_pad8, num_tiles), 8)
    num_tiles = pl.cdiv(B_pad8, tm)
    B_pad = num_tiles * tm

    x_p = jnp.pad(x, ((0, B_pad - B), (0, 0))) if B_pad != B else x

    # Tiny weights: pre-cast once in the wrapper (negligible traffic); biases
    # stay f32 for the f32 epilogue.
    w1_bf = w1.astype(jnp.bfloat16)
    w2_bf = w2.astype(jnp.bfloat16)
    b1_f32 = b1.astype(jnp.float32)
    b2_f32 = b2.astype(jnp.float32)

    flops = 2 * B_pad * (D_in * H + H * C)
    bytes_accessed = (B_pad * D_in * 4           # x read (f32)
                      + B_pad * C * 4            # logits written (f32)
                      + D_in * H * 2 + H * C * 2  # bf16 weights
                      + (H + C) * 4)             # f32 biases

    out_p = pl.pallas_call(
        attack_mlp_kernel,
        out_shape=jax.ShapeDtypeStruct((B_pad, C), jnp.float32),
        grid_spec=pl.GridSpec(
            grid=(num_tiles,),
            in_specs=[
                pl.BlockSpec((tm, D_in), lambda i: (i, 0)),  # x: tiled on batch
                pl.BlockSpec((D_in, H), lambda i: (0, 0)),   # W1: VMEM-resident
                pl.BlockSpec((1, H), lambda i: (0, 0)),      # b1: VMEM-resident
                pl.BlockSpec((H, C), lambda i: (0, 0)),      # W2: VMEM-resident
                pl.BlockSpec((1, C), lambda i: (0, 0)),      # b2: VMEM-resident
            ],
            out_specs=pl.BlockSpec((tm, C), lambda i: (i, 0)),
        ),
        compiler_params=pltpu.CompilerParams(
            # Batch tiles are independent -> megacore-shardable (2 TCs on v7x).
            dimension_semantics=("parallel",),
        ),
        cost_estimate=pl.CostEstimate(
            flops=flops, transcendentals=0, bytes_accessed=bytes_accessed),
    )(x_p, w1_bf, b1_f32, w2_bf, b2_f32)

    # Strip the (<=7 rows of) batch padding.  Padded rows contain
    # relu(b1) @ W2 + b2, so out_p must never be consumed unsliced.
    return out_p[:B, :]


if __name__ == "__main__":
    # Small shapes consistent with AttackMLP; batch deliberately not a
    # multiple of 8 so tail padding is exercised, and >= 16 rows so the
    # min-two-tiles path gives grid = (2,).
    batch = 13
    input_size = 32
    hidden_size = 64
    out_classes = 2

    key = jax.random.PRNGKey(0)
    kx, kw1, kb1, kw2, kb2 = jax.random.split(key, 5)

    # Deterministic synthetic parameters, stored pre-transposed as (in, out).
    x = jax.random.normal(kx, (batch, input_size), dtype=jnp.float32)
    w1 = jax.random.normal(kw1, (input_size, hidden_size), dtype=jnp.float32) * 0.1
    b1 = jax.random.normal(kb1, (1, hidden_size), dtype=jnp.float32) * 0.1
    w2 = jax.random.normal(kw2, (hidden_size, out_classes), dtype=jnp.float32) * 0.1
    b2 = jax.random.normal(kb2, (1, out_classes), dtype=jnp.float32) * 0.1

    out = attack_mlp(x, w1, b1, w2, b2)
    out = jax.block_until_ready(out)

    # Pure-JAX f32 reference (same semantics as the PyTorch forward);
    # tolerance accounts for the bf16 MXU inputs.
    ref = jnp.maximum(x @ w1 + b1, 0.0) @ w2 + b2
    assert out.shape == (batch, out_classes)
    assert jnp.allclose(out, ref, atol=2e-2, rtol=2e-2), "mismatch vs reference"

    print("KERNEL_OK")
</pallas_src>

<mosaic_0001>
module attributes {stable_mosaic.version = 11 : i64} {
  func.func @attack_mlp_kernel(%arg0: i32, %arg1: memref<8x32xf32, #tpu.memory_space<vmem>>, %arg2: memref<32x64xbf16, #tpu.memory_space<vmem>>, %arg3: memref<1x64xf32, #tpu.memory_space<vmem>>, %arg4: memref<64x2xbf16, #tpu.memory_space<vmem>>, %arg5: memref<1x2xf32, #tpu.memory_space<vmem>>, %arg6: memref<8x2xf32, #tpu.memory_space<vmem>>) attributes {dimension_semantics = [#tpu.dimension_semantics<parallel>], iteration_bounds = array<i64: 2>, scalar_prefetch = 0 : i64, scratch_operands = 0 : i64, tpu.core_type = #tpu.core_type<tc>, window_params = [{transform_indices = @transform_0, window_bounds = array<i64: 8, 32>}, {pipeline_mode = #tpu.pipeline_mode<synchronous>, transform_indices = @transform_1, window_bounds = array<i64: 32, 64>}, {pipeline_mode = #tpu.pipeline_mode<synchronous>, transform_indices = @transform_2, window_bounds = array<i64: 1, 64>}, {pipeline_mode = #tpu.pipeline_mode<synchronous>, transform_indices = @transform_3, window_bounds = array<i64: 64, 2>}, {pipeline_mode = #tpu.pipeline_mode<synchronous>, transform_indices = @transform_4, window_bounds = array<i64: 1, 2>}, {transform_indices = @transform_5, window_bounds = array<i64: 8, 2>}]} {
    %c0 = arith.constant 0 : index
    %c0_0 = arith.constant 0 : index
    %0 = vector.load %arg1[%c0, %c0_0] : memref<8x32xf32, #tpu.memory_space<vmem>>, vector<8x32xf32>
    %1 = arith.truncf %0 : vector<8x32xf32> to vector<8x32xbf16>
    %c0_1 = arith.constant 0 : index
    %c0_2 = arith.constant 0 : index
    %2 = vector.load %arg2[%c0_1, %c0_2] : memref<32x64xbf16, #tpu.memory_space<vmem>>, vector<32x64xbf16>
    %cst = arith.constant dense<0.000000e+00> : vector<8x64xf32>
    %3 = tpu.matmul %1, %2, %cst {dimension_numbers = #tpu.dot_dimension_numbers<[1], [0], [0], [1], [0, 0, 1, 1], [], []>} : vector<8x32xbf16>, vector<32x64xbf16>, vector<8x64xf32> -> vector<8x64xf32>
    %c0_3 = arith.constant 0 : index
    %c0_4 = arith.constant 0 : index
    %4 = vector.load %arg3[%c0_3, %c0_4] : memref<1x64xf32, #tpu.memory_space<vmem>>, vector<1x64xf32>
    %5 = vector.broadcast %4 : vector<1x64xf32> to vector<8x64xf32>
    %6 = arith.addf %3, %5 : vector<8x64xf32>
    %cst_5 = arith.constant 0.000000e+00 : f32
    %7 = vector.broadcast %cst_5 : f32 to vector<8x64xf32>
    %8 = arith.maximumf %6, %7 : vector<8x64xf32>
    %9 = arith.truncf %8 : vector<8x64xf32> to vector<8x64xbf16>
    %c0_6 = arith.constant 0 : index
    %c0_7 = arith.constant 0 : index
    %10 = vector.load %arg4[%c0_6, %c0_7] : memref<64x2xbf16, #tpu.memory_space<vmem>>, vector<64x2xbf16>
    %cst_8 = arith.constant dense<0.000000e+00> : vector<8x2xf32>
    %11 = tpu.matmul %9, %10, %cst_8 {dimension_numbers = #tpu.dot_dimension_numbers<[1], [0], [0], [1], [0, 0, 1, 1], [], []>} : vector<8x64xbf16>, vector<64x2xbf16>, vector<8x2xf32> -> vector<8x2xf32>
    %c0_9 = arith.constant 0 : index
    %c0_10 = arith.constant 0 : index
    %12 = vector.load %arg5[%c0_9, %c0_10] : memref<1x2xf32, #tpu.memory_space<vmem>>, vector<1x2xf32>
    %13 = vector.broadcast %12 : vector<1x2xf32> to vector<8x2xf32>
    %14 = arith.addf %11, %13 : vector<8x2xf32>
    %c0_11 = arith.constant 0 : index
    %c0_12 = arith.constant 0 : index
    %15 = vector.load %arg6[%c0_11, %c0_12] : memref<8x2xf32, #tpu.memory_space<vmem>>, vector<8x2xf32>
    tpu.vector_store %arg6[%c0_11, %c0_12], %14 {strides = array<i32>} : memref<8x2xf32, #tpu.memory_space<vmem>>, vector<8x2xf32>,
    return
  }
  func.func @transform_0(%arg0: i32) -> (i32, i32) {
    %c0_i32 = arith.constant 0 : i32
    %c0_i32_0 = arith.constant 0 : i32
    return %arg0, %c0_i32 : i32, i32
  }
  func.func @transform_1(%arg0: i32) -> (i32, i32) {
    %c0_i32 = arith.constant 0 : i32
    %c0_i32_0 = arith.constant 0 : i32
    %c0_i32_1 = arith.constant 0 : i32
    return %c0_i32, %c0_i32_0 : i32, i32
  }
  func.func @transform_2(%arg0: i32) -> (i32, i32) {
    %c0_i32 = arith.constant 0 : i32
    %c0_i32_0 = arith.constant 0 : i32
    %c0_i32_1 = arith.constant 0 : i32
    return %c0_i32, %c0_i32_0 : i32, i32
  }
  func.func @transform_3(%arg0: i32) -> (i32, i32) {
    %c0_i32 = arith.constant 0 : i32
    %c0_i32_0 = arith.constant 0 : i32
    %c0_i32_1 = arith.constant 0 : i32
    return %c0_i32, %c0_i32_0 : i32, i32
  }
  func.func @transform_4(%arg0: i32) -> (i32, i32) {
    %c0_i32 = arith.constant 0 : i32
    %c0_i32_0 = arith.constant 0 : i32
    %c0_i32_1 = arith.constant 0 : i32
    return %c0_i32, %c0_i32_0 : i32, i32
  }
  func.func @transform_5(%arg0: i32) -> (i32, i32) {
    %c0_i32 = arith.constant 0 : i32
    %c0_i32_0 = arith.constant 0 : i32
    return %arg0, %c0_i32 : i32, i32
  }
}

</mosaic_0001>

<bundles_post_ra>
// kernel: tpu_custom_call.1
= control target key start
LH: loop header
LB: loop body
LE: loop exit
PB: predicated region body
PF: predicated region fallthrough
CT: control target
= control target key end

     0   :  { %s459_s18 = smov 0   ;;  %s500_s0 = inlined_call_operand.vmem [shape: f32[16,32], index: 0, kind: input, shape index: {}]   ;;  %s501_s1 = inlined_call_operand.vmem [shape: bf16[32,64], index: 1, kind: input, shape index: {}]   ;;  %s502_s2 = inlined_call_operand.vmem [shape: f32[1,64], index: 2, kind: input, shape index: {}]   ;;  %s503_s3 = inlined_call_operand.vmem [shape: bf16[64,2], index: 3, kind: input, shape index: {}]   ;;  %s504_s4 = inlined_call_operand.vmem [shape: f32[1,2], index: 4, kind: input, shape index: {}]   ;;  %s505_s5 = inlined_call_operand.vmem [shape: f32[16,2], index: 5, kind: output, shape index: {}]  }
   0x1 LB: > { %s370_s19 = sadd.s32 4294967295, %s427_s18   ;;  %p374_p0 = scmp.ge.s32.totalorder %s427_s18, 1  ;;  %s427_s18 = sphi %s459_s18, %s15_s18  }
   0x2   : > { %p186_p1 = scmp.lt.s32.totalorder %s427_s18, 3 }
   0x4   : > { %p187_p2 = pnand %p374_p0, %p186_p1 }
   0x5   : > { %p212_p3 = scmp.lt.s32.totalorder (!%p187_p2), %s370_s19, 1 }
   0x6   : > { %190 = sbr.rel (%p187_p2) target bundleno = 285 (0x11d), region = 40 }
   0xb   : > { %v406_v0 = vld [vmem:[%s501_s1 + $0x8] sm:$0xff]  ;;  %v410_v1 = vld [vmem:[%s503_s3 + $0x18] sm:$0xff]  ;;  %v405_v2 = vld [vmem:[%s501_s1] sm:$0xff]  ;;  %s507_s19 = smov (!%p212_p3, %s370_s19), 1  ;;  %vm243_vm0 = vcmask 261120   ;;  %vm298_vm1 = vcmask 523264  }
   0xc   : > { %253 = vmatpush.bf16.msra.mxu0 %v406_v0  ;;  %306 = vmatpush.bf16.msra.mxu1 %v410_v1  ;;  %v409_v3 = vld [vmem:[%s503_s3 + $0x10] sm:$0xff]  ;;  %s375_s28 = sshll.u32 %s507_s19, 3  ;;  %v408_v6 = vld [vmem:[%s503_s3 + $0x8] sm:$0xff]  ;;  %v407_v7 = vld [vmem:[%s503_s3] sm:$0xff]  ;;  %vm315_vm2 = vcmask 15360  }
   0xd   : > { %s215_s6 = scalar_lea.vmem %s500_s0, %s375_s28  ;;  %v419_v8 = vld [vmem:[%s502_s2] ss:$0 sm:$0xff]  ;;  %s219_s17 = scalar_lea.vmem %s505_s5, %s375_s28 }
   0xe   : > { %v221_v4 = vld [vmem:[%s215_s6] sm:$0xff] }
   0xf   : > { %v222_v5 = vpack.c.bf16 %v221_v4, %v221_v4  ;;  %v420_v14 = vld [vmem:[%s504_s4] ss:$0 sm:$0xff] }
  0x10   : > { %254 = vmatpush.bf16.msra.mxu0 %v405_v2  ;;  %307 = vmatpush.bf16.msra.mxu1 %v409_v3 }
  0x13   : > { %385 = vmatmul.msk.bf16.vlgmr.msra.gmra.mxu0 %vm243_vm0, %v222_v5 }
  0x14   : > { %308 = vmatpush.bf16.msra.mxu1 %v408_v6 }
  0x18   : > { %309 = vmatpush.bf16.msra.mxu1 %v407_v7 }
  0x90   : > { %v256_v9 = vpop.f32.mrf.mxu0 }
  0x91   : > { %v257_v10 = vadd.f32 %v419_v8, %v256_v9 }
  0x93   : > { %v260_v11 = vmax.f32 %v257_v10, 0.0 }
  0x95   : > { %v261_v12 = vpack.c.bf16 %v260_v11, %v260_v11 }
  0x97   : > { %402 = vmatmul.msk.bf16.vlgmr.msra.gmra.mxu1 %vm298_vm1, %v261_v12 }
  0x98   : > { %v258_v13 = vpop.f32.mrf.mxu0 }
 0x114   : > { %v311_v15 = vpop.f32.mrf.mxu1 }
 0x115   : > { %v312_v16 = vadd.f32 %v420_v14, %v311_v15 }
 0x117   : > { %316 = vst.msk [vmem:[%s219_s17] sm:$0xff] %vm315_vm2, %v312_v16 }
 0x11c   : > { %v313_v17 = vpop.f32.mrf.mxu1 }
 0x11d PF: > { %s15_s18 = sadd.s32 1, %s427_s18  }
 0x11e   : > { %p12_p4 = scmp.ge.s32.totalorder %s15_s18, 4  }
 0x120   :  { %14 = sbr.rel (!%p12_p4) target bundleno = 1 (0x1), region = 70 }

</bundles_post_ra>
